<compile_context>
chip_gen: v6e
topology: v6e:2x2x1
jax: 0.10.0
libtpu: 0.0.40
codegen_flags: <defaults>
</compile_context>

<pallas_src>
import functools

import numpy as np
import jax
import jax.numpy as jnp
from jax import lax
from jax.experimental import pallas as pl
from jax.experimental.pallas import tpu as pltpu


def _proj_kernel(x_ref, wt_ref, h_ref):
    # h = x @ W^T on the MXU (kept as its own pallas_call / pipeline phase).
    h_ref[...] = jnp.dot(x_ref[...], wt_ref[...],
                         preferred_element_type=jnp.float32)


def _median_kernel(nbr_ref, deg_ref, h_ref, o_ref, gath_ref, *,
                   tile_n: int, k_max: int):
    """Per-tile gather + batched lower-median over K neighbor slots.

    nbr_ref : SMEM [N*K] int32 (scalar prefetch) flattened padded neighbor ids
    deg_ref : SMEM [N]   int32 (scalar prefetch) valid neighbor counts (>= 1)
    h_ref   : VMEM [N, C_out]      projected node features (phase-1 output)
    o_ref   : VMEM [tile_n, C_out] output rows for this node tile
    gath_ref: VMEM scratch [K*tile_n, C_out]; row k*tile_n + t = slot k, node t
    """
    i = pl.program_id(0)
    q = (k_max - 1) // 2          # fixed lower-median rank after padding trick

    def gather_node(t, carry):
        node = i * tile_n + t
        d = deg_ref[node]
        # Pad the K-d unused slots with (q - (d-1)//2) copies of -inf and the
        # rest with +inf; then the lower median of the d valid rows sits at
        # rank q of the padded K rows, independent of d.
        lo_end = d + q - (d - 1) // 2        # slots [d, lo_end) -> -inf, rest +inf
        base = node * k_max
        for k in range(k_max):               # small static inner loop; each row
            idx = nbr_ref[base + k]          # is stored immediately (tiny live set)
            row = h_ref[pl.ds(idx, 1), :]                        # (1, C_out)
            pad = jnp.where(k < lo_end, -jnp.inf, jnp.inf).astype(jnp.float32)
            gath_ref[pl.ds(k * tile_n + t, 1), :] = jnp.where(k < d, row, pad)
        return carry

    lax.fori_loop(0, tile_n, gather_node, 0, unroll=True)

    # Batched median for the whole tile: odd-even transposition sorting network
    # over the K slabs; every compare-exchange is VPU min/max on a dense
    # (tile_n, C_out) block (no XLU, no per-node (K,K,C) rank tensor).
    a = [gath_ref[pl.ds(k * tile_n, tile_n), :] for k in range(k_max)]
    for rnd in range(k_max):
        for j in range(rnd & 1, k_max - 1, 2):
            lo = jnp.minimum(a[j], a[j + 1])
            hi = jnp.maximum(a[j], a[j + 1])
            a[j], a[j + 1] = lo, hi

    # activation=None in the reference module -> identity.
    o_ref[...] = a[q].astype(o_ref.dtype)     # one dense (tile_n, C_out) store


def median_convolution(x, w, nbrs, deg, *, tile_n=8):
    """x: [N, C_in] f32, w: [C_out, C_in] f32 (PyTorch nn.Linear weight layout),
    nbrs: [N, K] int32 padded neighbor ids, deg: [N] int32 valid counts (>= 1)."""
    n, c_in = x.shape
    c_out = w.shape[0]
    k_max = nbrs.shape[1]
    assert n % tile_n == 0, "tile_n must divide N"

    wt = jnp.asarray(w, jnp.float32).T                        # (C_in, C_out)

    # ---- Phase 1: projection h = x @ W^T (its own pallas_call) -------------
    # Shapes here are tiny so a single full block suffices; at large M/N this
    # becomes the standard tiled MXU matmul (128/256-multiple tiles).
    h = pl.pallas_call(
        _proj_kernel,
        out_shape=jax.ShapeDtypeStruct((n, c_out), jnp.float32),
        grid=(1,),
        in_specs=[pl.BlockSpec((n, c_in), lambda i: (0, 0)),
                  pl.BlockSpec((c_in, c_out), lambda i: (0, 0))],
        out_specs=pl.BlockSpec((n, c_out), lambda i: (0, 0)),
    )(jnp.asarray(x, jnp.float32), wt)

    # ---- Phase 2: per-node lower-median aggregation -------------------------
    nbrs_flat = jnp.asarray(nbrs, jnp.int32).reshape(-1)      # 1-D -> compact SMEM
    deg = jnp.asarray(deg, jnp.int32)

    kernel = functools.partial(_median_kernel, tile_n=tile_n, k_max=k_max)

    h_bytes = n * c_out * 4
    gath_bytes = k_max * tile_n * c_out * 4
    out_bytes = tile_n * c_out * 4
    vmem_limit = int(min(64 * 2**20,                          # respect v7x VMEM
                         max(16 * 2**20,
                             2 * (h_bytes + gath_bytes + 2 * out_bytes))))

    return pl.pallas_call(
        kernel,
        out_shape=jax.ShapeDtypeStruct((n, c_out), jnp.float32),
        grid_spec=pltpu.PrefetchScalarGridSpec(
            num_scalar_prefetch=2,                # nbrs_flat, deg -> SMEM
            grid=(n // tile_n,),
            in_specs=[
                # Full h resident in VMEM (constant block -> loaded once).
                # TODO(synk): for large N switch to memory_space=pl.ANY + DMA
                # gather of the tile's neighbor rows.
                pl.BlockSpec((n, c_out), lambda i, nbr, dg: (0, 0)),
            ],
            out_specs=pl.BlockSpec((tile_n, c_out), lambda i, nbr, dg: (i, 0)),
            scratch_shapes=[pltpu.VMEM((k_max * tile_n, c_out), jnp.float32)],
        ),
        compiler_params=pltpu.CompilerParams(
            dimension_semantics=("parallel",),    # node tiles shard across TCs
            vmem_limit_bytes=vmem_limit),
    )(nbrs_flat, deg, h)


if __name__ == "__main__":
    N, C_IN, C_OUT, K = 16, 32, 128, 8

    key = jax.random.PRNGKey(0)
    kx, kw, kn, kd = jax.random.split(key, 4)

    x = jax.random.normal(kx, (N, C_IN), dtype=jnp.float32)
    # nn.Linear(in, out, bias=False): weight (out, in), U(-1/sqrt(in), 1/sqrt(in))
    bound = 1.0 / (C_IN ** 0.5)
    w = jax.random.uniform(kw, (C_OUT, C_IN), dtype=jnp.float32,
                           minval=-bound, maxval=bound)

    # Synthetic padded neighbor lists, variable degree 1..K (deg >= 1 required).
    deg = jax.random.randint(kd, (N,), 1, K + 1, dtype=jnp.int32)
    nbrs = jax.random.randint(kn, (N, K), 0, N, dtype=jnp.int32)
    nbrs = jnp.where(jnp.arange(K)[None, :] < deg[:, None], nbrs, 0)

    out = jax.block_until_ready(median_convolution(x, w, nbrs, deg, tile_n=8))

    # Pure reference check: torch.median returns the LOWER median per column.
    h_np = np.asarray(x @ w.T)
    nbrs_np, deg_np = np.asarray(nbrs), np.asarray(deg)
    ref = np.stack([
        np.sort(h_np[nbrs_np[node, :deg_np[node]]], axis=0)[(deg_np[node] - 1) // 2]
        for node in range(N)
    ])
    np.testing.assert_allclose(np.asarray(out), ref, rtol=1e-5, atol=1e-5)
    print("KERNEL_OK")
</pallas_src>

<mosaic_0001>
module attributes {stable_mosaic.version = 11 : i64} {
  func.func @_proj_kernel(%arg0: i32, %arg1: memref<16x32xf32, #tpu.memory_space<vmem>>, %arg2: memref<32x128xf32, #tpu.memory_space<vmem>>, %arg3: memref<16x128xf32, #tpu.memory_space<vmem>>) attributes {dimension_semantics = [#tpu.dimension_semantics<arbitrary>], iteration_bounds = array<i64: 1>, scalar_prefetch = 0 : i64, scratch_operands = 0 : i64, tpu.core_type = #tpu.core_type<tc>, window_params = [{pipeline_mode = #tpu.pipeline_mode<synchronous>, transform_indices = @transform_0, window_bounds = array<i64: 16, 32>}, {pipeline_mode = #tpu.pipeline_mode<synchronous>, transform_indices = @transform_1, window_bounds = array<i64: 32, 128>}, {pipeline_mode = #tpu.pipeline_mode<synchronous>, transform_indices = @transform_2, window_bounds = array<i64: 16, 128>}]} {
    %c0 = arith.constant 0 : index
    %c0_0 = arith.constant 0 : index
    %0 = vector.load %arg1[%c0, %c0_0] : memref<16x32xf32, #tpu.memory_space<vmem>>, vector<16x32xf32>
    %c0_1 = arith.constant 0 : index
    %c0_2 = arith.constant 0 : index
    %1 = vector.load %arg2[%c0_1, %c0_2] : memref<32x128xf32, #tpu.memory_space<vmem>>, vector<32x128xf32>
    %cst = arith.constant dense<0.000000e+00> : vector<16x128xf32>
    %2 = tpu.matmul %0, %1, %cst {dimension_numbers = #tpu.dot_dimension_numbers<[1], [0], [0], [1], [0, 0, 1, 1], [], []>} : vector<16x32xf32>, vector<32x128xf32>, vector<16x128xf32> -> vector<16x128xf32>
    %c0_3 = arith.constant 0 : index
    %c0_4 = arith.constant 0 : index
    %3 = vector.load %arg3[%c0_3, %c0_4] : memref<16x128xf32, #tpu.memory_space<vmem>>, vector<16x128xf32>
    tpu.vector_store %arg3[%c0_3, %c0_4], %2 {strides = array<i32>} : memref<16x128xf32, #tpu.memory_space<vmem>>, vector<16x128xf32>,
    return
  }
  func.func @transform_0(%arg0: i32) -> (i32, i32) {
    %c0_i32 = arith.constant 0 : i32
    %c0_i32_0 = arith.constant 0 : i32
    %c0_i32_1 = arith.constant 0 : i32
    return %c0_i32, %c0_i32_0 : i32, i32
  }
  func.func @transform_1(%arg0: i32) -> (i32, i32) {
    %c0_i32 = arith.constant 0 : i32
    %c0_i32_0 = arith.constant 0 : i32
    %c0_i32_1 = arith.constant 0 : i32
    return %c0_i32, %c0_i32_0 : i32, i32
  }
  func.func @transform_2(%arg0: i32) -> (i32, i32) {
    %c0_i32 = arith.constant 0 : i32
    %c0_i32_0 = arith.constant 0 : i32
    %c0_i32_1 = arith.constant 0 : i32
    return %c0_i32, %c0_i32_0 : i32, i32
  }
}

</mosaic_0001>

<bundles_post_ra>
// kernel: tpu_custom_call.1
= control target key start
LH: loop header
LB: loop body
LE: loop exit
PB: predicated region body
PF: predicated region fallthrough
CT: control target
= control target key end

     0   :  { %7 = vsyncpa [#allocation3], 0  ;;  %s278_s0 = inlined_call_operand.hbm [shape: f32[16,32], index: 0, kind: input, shape index: {}]   ;;  %s279_s1 = inlined_call_operand.hbm [shape: f32[32,128], index: 1, kind: input, shape index: {}]   ;;  %s280_s2 = inlined_call_operand.hbm [shape: f32[16,128], index: 2, kind: output, shape index: {}]  }
   0x1   :  { %8 = vsyncpa [#allocation6], 0 }
   0x2   :  { %9 = vsyncpa [#allocation4], 0  ;;  %s238_s9 = smov [#allocation2]  }
   0x3   :  { %s15_s10 = sshll.u32 %s238_s9, 4  ;;  %s16_s10 = int_to_ptr.vmem [resolvable:$true] %s15_s10 }
   0x4   :  { %s180_s11 = scalar_lea.vmem %s16_s10, 256  ;;  %p185_p1 = scmp.lt.s32.totalorder %s16_s10, %s16_s10 }
   0x5   :  { %p181_p0 = scmp.ne.s32.totalorder %s16_s10, %s180_s11  ;;  %p186_p2 = scmp.lt.s32.totalorder %s180_s11, %s180_s11 }
   0x7   :  { %p187_p3 = por %p186_p2, %p185_p1 }
   0x9   :  { %p188_p4 = pnand %p187_p3, %p181_p0 }
   0xb   :  { %191 = shalt.err (!%p188_p4)
}
   0xc   :  { %s239_s12 = smov 128   ;;  %s240_s13 = smov 8  }
   0xd   :  { %21 = dma.hbm_to_vmem [thread:$0]  %s278_s0, 256, %s16_s10, [#allocation3], %s239_s12, %s239_s12, %s240_s13  }
   0xe   :  { %s241_s16 = smov [#allocation5]  }
   0xf   :  { %s27_s17 = sshll.u32 %s241_s16, 4  ;;  %s28_s17 = int_to_ptr.vmem [resolvable:$true] %s27_s17 }
  0x10   :  { %s200_s18 = scalar_lea.vmem %s28_s17, 512  ;;  %p205_p6 = scmp.lt.s32.totalorder %s28_s17, %s28_s17 }
  0x11   :  { %p201_p5 = scmp.ne.s32.totalorder %s28_s17, %s200_s18  ;;  %p206_p7 = scmp.lt.s32.totalorder %s200_s18, %s200_s18 }
  0x13   :  { %p207_p8 = por %p206_p7, %p205_p6 }
  0x15   :  { %p208_p9 = pnand %p207_p8, %p201_p5 }
  0x17   :  { %211 = shalt.err (!%p208_p9)
}
  0x18   :  { %33 = dma.hbm_to_vmem [thread:$0]  %s279_s1, 512, %s28_s17, [#allocation6], %s239_s12, %s239_s12, %s240_s13  }
  0x19   :  { %232 = dma.done.wait [#allocation3], 256  }
  0x1a   :  { %233 = vsyncadd [#allocation3], 4294967040 }
  0x1b   :  { %234 = dma.done.wait [#allocation6], 512  }
  0x1c   :  { %235 = vsyncadd [#allocation6], 4294966784  ;;  %vm46_vm0 = vcmask 261120   ;;  %v45_v0 = vld [vmem:[#allocation5 + $0x18] sm:$0xff]  ;;  %v44_v1 = vld [vmem:[#allocation5 + $0x10] sm:$0xff]  ;;  %s242_s0 = smov [#allocation7]  }
  0x1d   :  { %156 = vmatprep.subr.mxu0 %v45_v0  ;;  %v40_v2 = vld [vmem:[#allocation2] sm:$0xff]  ;;  %v43_v3 = vld [vmem:[#allocation5 + $0x8] sm:$0xff]  ;;  %v42_v4 = vld [vmem:[#allocation5] sm:$0xff]  ;;  %s135_s1 = sshll.u32 %s242_s0, 4  ;;  %s136_s1 = int_to_ptr.vmem [resolvable:$true] %s135_s1 }
  0x1e   :  { %157 = vmatpush3.msra.mxu0 %v45_v0  ;;  %164 = vmatprep.mubr.msk.f32.mxu0 %vm46_vm0, %v40_v2  ;;  %v41_v5 = vld [vmem:[#allocation2 + $0x8] sm:$0xff]  ;;  %s212_s21 = scalar_lea.vmem %s136_s1, 256  ;;  %p217_p11 = scmp.lt.s32.totalorder %s136_s1, %s136_s1 }
  0x1f   :  { %158 = vmatprep.subr.mxu0 %v44_v1  ;;  %p213_p10 = scmp.ne.s32.totalorder %s136_s1, %s212_s21  ;;  %p218_p12 = scmp.lt.s32.totalorder %s212_s21, %s212_s21 }
  0x20   :  { %159 = vmatpush3.msra.mxu0 %v44_v1 }
  0x21   :  { %160 = vmatprep.subr.mxu0 %v43_v3  ;;  %p219_p13 = por %p218_p12, %p217_p11 }
  0x22   :  { %161 = vmatpush3.msra.mxu0 %v43_v3 }
  0x23   :  { %162 = vmatprep.subr.mxu0 %v42_v4  ;;  %p220_p0 = pnand %p219_p13, %p213_p10 }
  0x24   :  { %163 = vmatpush3.msra.mxu0 %v42_v4 }
  0x25   :  { %165 = vmatmul.mubr.msk.f32.vlgmr.msra.gmra.mxu0 %vm46_vm0, %v41_v5 }
  0xe5   :  { %v166_v6 = vpop.f32.mrf.mxu0 }
  0xe6   :  { %129 = vst [vmem:[#allocation7 + $0x8] sm:$0xff] %v166_v6 }
  0xe7   :  { %v119_v7 = vpop.f32.mrf.mxu0 }
  0xe8   :  { %128 = vst [vmem:[#allocation7] sm:$0xff] %v119_v7 }
  0xe9   :  { %223 = shalt.err (!%p220_p0)
}
  0xea   :  { %141 = dma.vmem_to_hbm [thread:$0]  %s136_s1, 256, %s280_s2, [#allocation4], %s239_s12, %s239_s12, %s240_s13  }
  0xeb   :  { %236 = dma.done.wait [#allocation4], 256  }
  0xec   :  { %237 = vsyncadd [#allocation4], 4294967040 }
  0xed   :  { %145 = vsyncpa [#allocation3], 1 }
  0xee   :  { %146 = vsyncpa [#allocation6], 1 }
  0xef   :  { %147 = vsyncpa [#allocation4], 1 }

</bundles_post_ra>
